<compile_context>
chip_gen: v5e
topology: v5e:2x2
jax: 0.10.0
libtpu: 0.0.40
codegen_flags: <defaults>
</compile_context>

<pallas_src>
import functools

import jax
import jax.numpy as jnp
from jax import lax
from jax.experimental import pallas as pl
from jax.experimental.pallas import tpu as pltpu

_BIG = 1e30  # "infinite" squared norm for padded class columns


def _round_up(x, m):
    return (x + m - 1) // m * m


def _center_loss_kernel(emb_ref, tgt_ref, cent2t_ref, csq_ref, col_ref, out_ref, *,
                        lambd, batch, tile_b, steps_per_core, compute_dtype, precision):
    p = pl.program_id(0)   # TensorCore index (parallel on v7x, serialized on v5e/v6e)
    i = pl.program_id(1)   # batch-tile step (reduction into the resident out block)

    @pl.when(i == 0)
    def _():
        out_ref[...] = jnp.zeros_like(out_ref)

    emb = emb_ref[...].astype(compute_dtype)     # [TB, D]
    cent2t = cent2t_ref[...]                     # [D, Cp]   (= 2 * centers^T, resident)
    csq = csq_ref[...]                           # [1, Cp]   (||c||^2, +BIG for padded cols)
    col = col_ref[...]                           # [1, Cp]   int32 class ids (resident)
    tgt = tgt_ref[...]                           # [TB, 1]   int32

    TB = emb.shape[0]

    # MXU: 2 * e.c ; then s = ||c||^2 - 2 e.c  (||e||^2 cancels in the loss).
    cross2 = jnp.dot(emb, cent2t, preferred_element_type=jnp.float32,
                     precision=precision)        # [TB, Cp] f32
    s = csq - cross2

    # Intra-class term picked out of the same s matrix.
    is_tgt = col == tgt                                              # [TB, Cp]
    s_t = jnp.sum(jnp.where(is_tgt, s, 0.0), axis=1, keepdims=True)  # [TB, 1]

    # Row mask handles both the ragged last batch tile and the other core's phantom
    # steps, so the wrapper never materializes a padded copy of the embeddings.
    gstep = p * steps_per_core + i
    row = lax.broadcasted_iota(jnp.int32, (TB, 1), 0)
    row_ok = gstep * tile_b + row < batch                            # [TB, 1]

    valid = jnp.logical_and(row_ok, jnp.logical_not(is_tgt))         # [TB, Cp]
    margins = jnp.where(valid, jnp.maximum(lambd + s_t - s, 0.0), 0.0)

    # Per-class partial sums; cross-lane reduce + 1/(B*(C-1)) happen in the wrapper.
    out_ref[0] += jnp.sum(margins, axis=0, keepdims=True)


def center_loss(embeddings, targets, centers, lambd, *, tile_b=256, use_bf16=False,
                num_cores=2, precision=None):
    """embeddings: [B, D], targets: [B] int, centers: [C, D] -> scalar f32 loss.

    use_bf16=True feeds the MXU bf16 operands (faster on all MXU generations) at a
    small precision cost for margins near the relu threshold; precision can be set
    to lax.Precision.HIGHEST for exact agreement with an f32 reference.
    """
    B, D = embeddings.shape
    C, Dc = centers.shape
    if Dc != D:
        raise ValueError("centers feature dim must match embeddings feature dim")
    if C <= 1:
        raise ValueError("CenterLoss requires n_classes > 1 (denominator B*(C-1)).")
    inv_denom = 1.0 / float(B * (C - 1))

    f32 = jnp.float32
    compute_dtype = jnp.bfloat16 if use_bf16 else f32
    C_pad = _round_up(C, 128)

    # Small wrapper-side prep: only [C, D]- and [1, C_pad]-sized copies.  The big
    # [B, D] embeddings stream straight from HBM without a pad-copy.
    cent = centers.astype(f32)
    csq = jnp.full((1, C_pad), _BIG, f32).at[0, :C].set(jnp.sum(cent * cent, axis=1))
    cent2t = jnp.zeros((D, C_pad), compute_dtype).at[:, :C].set(
        (2.0 * cent).T.astype(compute_dtype))
    col_ids = lax.broadcasted_iota(jnp.int32, (1, C_pad), 1)
    tgt2 = targets.reshape(B, 1).astype(jnp.int32)

    # ---- tile_b / VMEM budgeting, derived per TPU generation ----------------------
    try:
        vmem_cap = int(pltpu.get_tpu_info().vmem_capacity_bytes)
    except Exception:  # interpret mode / older jax
        vmem_cap = 128 * 1024 * 1024
    budget = vmem_cap // 4

    emb_isz = jnp.dtype(embeddings.dtype).itemsize
    cent_isz = jnp.dtype(compute_dtype).itemsize

    def vmem_est(tb):
        lane = lambda n: _round_up(max(n, 1), 128)
        sub = lambda n: _round_up(max(n, 1), 8)
        return (2 * sub(tb) * lane(D) * emb_isz      # embedding tiles (double-buffered)
                + 2 * sub(tb) * 128 * 4              # target tiles
                + 2 * sub(D) * C_pad * cent_isz      # resident 2*centers^T
                + 2 * 2 * 8 * C_pad * 4              # csq + class-id rows
                + 2 * 8 * C_pad * 4)                 # per-core output accumulator row

    tile_b = max(8, min(_round_up(tile_b, 8), _round_up(B, 8)))
    while tile_b > 8 and vmem_est(tile_b) > budget:
        tile_b = max(8, _round_up(tile_b // 2, 8))
    # TODO(synk): for very large C*D (resident centers alone near the budget, hit
    # first on v7x's 64 MiB VMEM) add an inner "arbitrary" grid axis over class
    # tiles, and single-buffer the resident blocks via pipeline_mode=pl.Buffered(1).

    nb = -(-B // tile_b)                  # number of real batch tiles
    spc = -(-nb // num_cores)             # batch tiles per core
    grid = (num_cores, spc)
    last_block = nb - 1

    vmem_limit = int(1.5 * vmem_est(tile_b)) + (8 << 20)
    vmem_limit = min(max(vmem_limit, 16 << 20), vmem_cap // 2)

    kernel = functools.partial(
        _center_loss_kernel, lambd=float(lambd), batch=B, tile_b=tile_b,
        steps_per_core=spc, compute_dtype=compute_dtype, precision=precision)

    def row_map(p, i):  # clamp phantom steps onto the last real tile (rows get masked)
        return (jnp.minimum(p * spc + i, last_block), 0)

    out = pl.pallas_call(
        kernel,
        out_shape=jax.ShapeDtypeStruct((num_cores, 1, C_pad), jnp.float32),
        grid_spec=pltpu.PrefetchScalarGridSpec(
            num_scalar_prefetch=0,
            grid=grid,
            in_specs=[
                pl.BlockSpec((tile_b, D), row_map),             # embeddings (streamed)
                pl.BlockSpec((tile_b, 1), row_map),             # targets    (streamed)
                pl.BlockSpec((D, C_pad), lambda p, i: (0, 0)),  # 2*centers^T (resident)
                pl.BlockSpec((1, C_pad), lambda p, i: (0, 0)),  # ||c||^2     (resident)
                pl.BlockSpec((1, C_pad), lambda p, i: (0, 0)),  # class ids   (resident)
            ],
            out_specs=pl.BlockSpec((1, 1, C_pad), lambda p, i: (p, 0, 0)),
        ),
        compiler_params=pltpu.CompilerParams(
            # core axis is parallel (2 TCs on v7x); batch-tile axis reduces into the
            # per-core resident output block, so it must be "arbitrary".
            dimension_semantics=("parallel", "arbitrary"),
            vmem_limit_bytes=vmem_limit,
        ),
    )(embeddings, tgt2, cent2t, csq, col_ids)

    # Tiny [num_cores, 1, C_pad] reduce + scale in plain XLA.
    return jnp.sum(out) * inv_denom


def center_loss_ref(embeddings, targets, centers, lambd):
    """Pure-JAX reference matching the PyTorch loop semantics."""
    B = embeddings.shape[0]
    C = centers.shape[0]
    d2 = jnp.sum((embeddings[:, None, :] - centers[None, :, :]) ** 2, axis=-1)  # [B,C]
    intra = d2[jnp.arange(B), targets][:, None]                                 # [B,1]
    mask = jnp.arange(C)[None, :] != targets[:, None]                           # [B,C]
    m = jnp.where(mask, jnp.maximum(lambd + intra - d2, 0.0), 0.0)
    return jnp.sum(m) / (B * (C - 1))


if __name__ == "__main__":
    key = jax.random.PRNGKey(0)

    def run_case(B, D, C, lambd, **kw):
        k1, k2, k3 = jax.random.split(jax.random.fold_in(key, B * 131 + D), 3)
        emb = jax.random.normal(k1, (B, D), dtype=jnp.float32)
        tgt = jax.random.randint(k2, (B,), 0, C, dtype=jnp.int32)
        cent = jax.random.normal(k3, (C, D), dtype=jnp.float32)
        got = jax.block_until_ready(center_loss(emb, tgt, cent, lambd, **kw))
        want = jax.block_until_ready(center_loss_ref(emb, tgt, cent, lambd))
        assert jnp.allclose(got, want, rtol=1e-3, atol=1e-3), (B, D, C, got, want)

    # Small shapes consistent with the module: batch=8, hidden=32, n_classes=4.
    run_case(8, 32, 4, 0.5)
    # Ragged batch + several tiles per core: exercises the in-kernel row masking
    # (no wrapper pad-copy) and the 2-core grid split / clamped phantom steps.
    run_case(50, 48, 5, 0.3, tile_b=8)

    print("KERNEL_OK")
</pallas_src>

<mosaic_0001>
module attributes {stable_mosaic.version = 11 : i64} {
  func.func @_center_loss_kernel(%arg0: i32, %arg1: i32, %arg2: memref<8x32xf32, #tpu.memory_space<vmem>>, %arg3: memref<8x1xi32, #tpu.memory_space<vmem>>, %arg4: memref<32x128xf32, #tpu.memory_space<vmem>>, %arg5: memref<1x128xf32, #tpu.memory_space<vmem>>, %arg6: memref<1x128xi32, #tpu.memory_space<vmem>>, %arg7: memref<1x1x128xf32, #tpu.memory_space<vmem>>) attributes {dimension_semantics = [#tpu.dimension_semantics<parallel>, #tpu.dimension_semantics<arbitrary>], iteration_bounds = array<i64: 2, 1>, scalar_prefetch = 0 : i64, scratch_operands = 0 : i64, tpu.core_type = #tpu.core_type<tc>, window_params = [{transform_indices = @transform_0, window_bounds = array<i64: 8, 32>}, {transform_indices = @transform_1, window_bounds = array<i64: 8, 1>}, {pipeline_mode = #tpu.pipeline_mode<synchronous>, transform_indices = @transform_2, window_bounds = array<i64: 32, 128>}, {pipeline_mode = #tpu.pipeline_mode<synchronous>, transform_indices = @transform_3, window_bounds = array<i64: 1, 128>}, {pipeline_mode = #tpu.pipeline_mode<synchronous>, transform_indices = @transform_4, window_bounds = array<i64: 1, 128>}, {transform_indices = @transform_5, window_bounds = array<i64: 1, 1, 128>}]} {
    %c0_i32 = arith.constant 0 : i32
    %0 = arith.cmpi eq, %arg1, %c0_i32 : i32
    %1 = arith.extui %0 : i1 to i32
    %c0_i32_0 = arith.constant 0 : i32
    %2 = arith.cmpi ne, %1, %c0_i32_0 : i32
    scf.if %2 {
      %cst_24 = arith.constant 0.000000e+00 : f32
      %45 = vector.broadcast %cst_24 : f32 to vector<1x1x128xf32>
      %c0_25 = arith.constant 0 : index
      %c0_26 = arith.constant 0 : index
      %c0_27 = arith.constant 0 : index
      %46 = vector.load %arg7[%c0_25, %c0_26, %c0_27] : memref<1x1x128xf32, #tpu.memory_space<vmem>>, vector<1x1x128xf32>
      tpu.vector_store %arg7[%c0_25, %c0_26, %c0_27], %45 {strides = array<i32>} : memref<1x1x128xf32, #tpu.memory_space<vmem>>, vector<1x1x128xf32>,
    } else {
    }
    %c0 = arith.constant 0 : index
    %c0_1 = arith.constant 0 : index
    %3 = vector.load %arg2[%c0, %c0_1] : memref<8x32xf32, #tpu.memory_space<vmem>>, vector<8x32xf32>
    %c0_2 = arith.constant 0 : index
    %c0_3 = arith.constant 0 : index
    %4 = vector.load %arg4[%c0_2, %c0_3] : memref<32x128xf32, #tpu.memory_space<vmem>>, vector<32x128xf32>
    %c0_4 = arith.constant 0 : index
    %c0_5 = arith.constant 0 : index
    %5 = vector.load %arg5[%c0_4, %c0_5] : memref<1x128xf32, #tpu.memory_space<vmem>>, vector<1x128xf32>
    %c0_6 = arith.constant 0 : index
    %c0_7 = arith.constant 0 : index
    %6 = vector.load %arg6[%c0_6, %c0_7] : memref<1x128xi32, #tpu.memory_space<vmem>>, vector<1x128xi32>
    %c0_8 = arith.constant 0 : index
    %c0_9 = arith.constant 0 : index
    %7 = vector.load %arg3[%c0_8, %c0_9] : memref<8x1xi32, #tpu.memory_space<vmem>>, vector<8x1xi32>
    %cst = arith.constant dense<0.000000e+00> : vector<8x128xf32>
    %8 = tpu.matmul %3, %4, %cst {dimension_numbers = #tpu.dot_dimension_numbers<[1], [0], [0], [1], [0, 0, 1, 1], [], []>} : vector<8x32xf32>, vector<32x128xf32>, vector<8x128xf32> -> vector<8x128xf32>
    %9 = vector.broadcast %5 : vector<1x128xf32> to vector<8x128xf32>
    %10 = arith.subf %9, %8 : vector<8x128xf32>
    %11 = vector.broadcast %6 : vector<1x128xi32> to vector<8x128xi32>
    %12 = vector.broadcast %7 : vector<8x1xi32> to vector<8x128xi32>
    %13 = arith.cmpi eq, %11, %12 : vector<8x128xi32>
    %cst_10 = arith.constant 0.000000e+00 : f32
    %14 = vector.broadcast %cst_10 : f32 to vector<8x128xf32>
    %15 = arith.select %13, %10, %14 : vector<8x128xi1>, vector<8x128xf32>
    %cst_11 = arith.constant dense<0.000000e+00> : vector<8xf32>
    %16 = vector.multi_reduction <add>, %15, %cst_11 [1] : vector<8x128xf32> to vector<8xf32>
    %17 = vector.shape_cast %16 : vector<8xf32> to vector<8x1xf32>
    %c1_i32 = arith.constant 1 : i32
    %18 = arith.muli %arg0, %c1_i32 : i32
    %19 = arith.addi %18, %arg1 : i32
    %20 = tpu.iota {dimensions = array<i32: 0>} : vector<8x1xi32>
    %c8_i32 = arith.constant 8 : i32
    %21 = arith.muli %19, %c8_i32 : i32
    %22 = vector.broadcast %21 : i32 to vector<8x1xi32>
    %23 = arith.addi %22, %20 : vector<8x1xi32>
    %c8_i32_12 = arith.constant 8 : i32
    %24 = vector.broadcast %c8_i32_12 : i32 to vector<8x1xi32>
    %25 = arith.cmpi slt, %23, %24 : vector<8x1xi32>
    %cst_13 = arith.constant dense<true> : vector<8x128xi1>
    %26 = arith.xori %13, %cst_13 : vector<8x128xi1>
    %27 = vector.broadcast %25 : vector<8x1xi1> to vector<8x128xi1>
    %28 = arith.andi %27, %26 : vector<8x128xi1>
    %cst_14 = arith.constant 5.000000e-01 : f32
    %29 = vector.broadcast %cst_14 : f32 to vector<8x1xf32>
    %30 = arith.addf %29, %17 : vector<8x1xf32>
    %31 = vector.broadcast %30 : vector<8x1xf32> to vector<8x128xf32>
    %32 = arith.subf %31, %10 : vector<8x128xf32>
    %cst_15 = arith.constant 0.000000e+00 : f32
    %33 = vector.broadcast %cst_15 : f32 to vector<8x128xf32>
    %34 = arith.maximumf %32, %33 : vector<8x128xf32>
    %cst_16 = arith.constant 0.000000e+00 : f32
    %35 = vector.broadcast %cst_16 : f32 to vector<8x128xf32>
    %36 = arith.select %28, %34, %35 : vector<8x128xi1>, vector<8x128xf32>
    %c0_17 = arith.constant 0 : index
    %c0_18 = arith.constant 0 : index
    %c0_19 = arith.constant 0 : index
    %37 = vector.load %arg7[%c0_17, %c0_18, %c0_19] : memref<1x1x128xf32, #tpu.memory_space<vmem>>, vector<1x1x128xf32>
    %38 = vector.shape_cast %37 : vector<1x1x128xf32> to vector<1x128xf32>
    %cst_20 = arith.constant dense<0.000000e+00> : vector<128xf32>
    %39 = vector.multi_reduction <add>, %36, %cst_20 [0] : vector<8x128xf32> to vector<128xf32>
    %40 = vector.shape_cast %39 : vector<128xf32> to vector<1x128xf32>
    %41 = arith.addf %38, %40 : vector<1x128xf32>
    %c0_21 = arith.constant 0 : index
    %c0_22 = arith.constant 0 : index
    %c0_23 = arith.constant 0 : index
    %42 = vector.load %arg7[%c0_21, %c0_22, %c0_23] : memref<1x1x128xf32, #tpu.memory_space<vmem>>, vector<1x1x128xf32>
    %43 = vector.shape_cast %42 : vector<1x1x128xf32> to vector<1x128xf32>
    %44 = vector.shape_cast %41 : vector<1x128xf32> to vector<1x1x128xf32>
    tpu.vector_store %arg7[%c0_21, %c0_22, %c0_23], %44 {strides = array<i32>} : memref<1x1x128xf32, #tpu.memory_space<vmem>>, vector<1x1x128xf32>,
    return
  }
  func.func @transform_0(%arg0: i32, %arg1: i32) -> (i32, i32) {
    %c1_i32 = arith.constant 1 : i32
    %0 = arith.muli %arg0, %c1_i32 : i32
    %1 = arith.addi %0, %arg1 : i32
    %c0_i32 = arith.constant 0 : i32
    %2 = arith.minsi %1, %c0_i32 : i32
    %c0_i32_0 = arith.constant 0 : i32
    %c0_i32_1 = arith.constant 0 : i32
    return %2, %c0_i32_0 : i32, i32
  }
  func.func @transform_1(%arg0: i32, %arg1: i32) -> (i32, i32) {
    %c1_i32 = arith.constant 1 : i32
    %0 = arith.muli %arg0, %c1_i32 : i32
    %1 = arith.addi %0, %arg1 : i32
    %c0_i32 = arith.constant 0 : i32
    %2 = arith.minsi %1, %c0_i32 : i32
    %c0_i32_0 = arith.constant 0 : i32
    %c0_i32_1 = arith.constant 0 : i32
    return %2, %c0_i32_0 : i32, i32
  }
  func.func @transform_2(%arg0: i32, %arg1: i32) -> (i32, i32) {
    %c0_i32 = arith.constant 0 : i32
    %c0_i32_0 = arith.constant 0 : i32
    %c0_i32_1 = arith.constant 0 : i32
    return %c0_i32, %c0_i32_0 : i32, i32
  }
  func.func @transform_3(%arg0: i32, %arg1: i32) -> (i32, i32) {
    %c0_i32 = arith.constant 0 : i32
    %c0_i32_0 = arith.constant 0 : i32
    %c0_i32_1 = arith.constant 0 : i32
    return %c0_i32, %c0_i32_0 : i32, i32
  }
  func.func @transform_4(%arg0: i32, %arg1: i32) -> (i32, i32) {
    %c0_i32 = arith.constant 0 : i32
    %c0_i32_0 = arith.constant 0 : i32
    %c0_i32_1 = arith.constant 0 : i32
    return %c0_i32, %c0_i32_0 : i32, i32
  }
  func.func @transform_5(%arg0: i32, %arg1: i32) -> (i32, i32, i32) {
    %c0_i32 = arith.constant 0 : i32
    %c0_i32_0 = arith.constant 0 : i32
    %c0_i32_1 = arith.constant 0 : i32
    return %arg0, %c0_i32, %c0_i32_0 : i32, i32, i32
  }
}

</mosaic_0001>

<bundles_post_ra>
// kernel: tpu_custom_call.1
= control target key start
LH: loop header
LB: loop body
LE: loop exit
PB: predicated region body
PF: predicated region fallthrough
CT: control target
= control target key end

     0   :  { %10 = vsyncpa [#allocation3], 0  ;;  %s845_s0 = inlined_call_operand.vmem [shape: f32[8,32], index: 0, kind: input, shape index: {}]   ;;  %s846_s1 = inlined_call_operand.vmem [shape: s32[8,1], index: 1, kind: input, shape index: {}]   ;;  %s847_s2 = inlined_call_operand.hbm [shape: f32[32,128], index: 2, kind: input, shape index: {}]   ;;  %s848_s3 = inlined_call_operand.vmem [shape: f32[1,128], index: 3, kind: input, shape index: {}]   ;;  %s849_s4 = inlined_call_operand.vmem [shape: s32[1,128], index: 4, kind: input, shape index: {}]   ;;  %s850_s5 = inlined_call_operand.hbm [shape: f32[2,1,128], index: 5, kind: output, shape index: {}]  }
   0x1   :  { %11 = vsyncpa [#allocation4], 0 }
   0x2   :  { %13 = vsyncpa [#allocation4 + $0x1], 0  ;;  %s723_s18 = smov 0   ;;  %s725_s19 = smov 0  }
   0x3   :  { %s727_s20 = smov 0   ;;  %s729_s21 = smov 0  }
   0x4   :  { %s731_s22 = smov 0   ;;  %s733_s23 = smov 0  }
   0x5 LB: > { %s480_s24 = sadd.s32 4294967295, %s685_s23   ;;  %s481_s25 = sadd.s32 4294967294, %s685_s23   ;;  %s685_s23 = sphi %s733_s23, %s19_s23   ;;  %s681_s22 = sphi %s731_s22, %s857_s22   ;;  %s677_s21 = sphi %s729_s21, %s856_s21   ;;  %s673_s20 = sphi %s727_s20, %s855_s20   ;;  %s669_s19 = sphi %s725_s19, %s854_s19   ;;  %s665_s18 = sphi %s723_s18, %s853_s18  }
   0x6   : > { %s31_s26 = sadd.s32 1, %s681_s22  ;;  %s165_s27 = sadd.s32 1, %s673_s20 }
   0x7   : > { %p33_p0 = scmp.ge.s32.totalorder %s31_s26, 2  ;;  %p175_p1 = scmp.ne.s32.totalorder %s673_s20, %s669_s19 }
   0x8   : > { %p176_p2 = scmp.eq.s32.totalorder %s480_s24, 1  ;;  %p181_p3 = scmp.ne.s32.totalorder %s669_s19, %s665_s18 }
   0x9   : > { %s859_s26 = smov (%p33_p0, %s31_s26), 0  ;;  %p182_p5 = scmp.eq.s32.totalorder %s481_s25, 1 }
   0xa   : > { %p763_p4 = por %p176_p2, %p175_p1  ;;  %s162_s29 = ssub.s32 %s681_s22, %s859_s26 }
   0xb   : > { %p482_p6 = scmp.ge.s32.totalorder %s685_s23, 1  ;;  %p163_p7 = scmp.eq.s32.totalorder %s162_s29, 0 }
   0xc   : > { %p770_p8 = por %p182_p5, %p181_p3  ;;  %p189_p9 = scmp.lt.s32.totalorder %s685_s23, 3 }
   0xd   : > { %s776_s6 = scalar_select %p163_p7, %s673_s20, %s165_s27  }
   0xe   : > { %p190_p10 = pnand %p482_p6, %p189_p9  ;;  %p513_p11 = scmp.eq.s32.totalorder %s480_s24, 0 }
   0xf   : > { %s200_s9 = sshll.u32 %s847_s2, 4  ;;  %s687_s10 = smov [#allocation2]   ;;  %s201_s9 = int_to_ptr.hbm [resolvable:$true] %s200_s9 }
  0x10   : > { %p505_p12 = pneg %p190_p10  ;;  %s202_s11 = sshll.u32 %s687_s10, 4  ;;  %s203_s11 = int_to_ptr.vmem [resolvable:$true] %s202_s11 }
  0x11   : > { %s688_s12 = smov 128   ;;  %s689_s13 = smov 8  }
  0x12   : > { %p506_p13 = pnand %p513_p11, %p505_p12  ;;  %250 = sbr.rel (%p190_p10) target bundleno = 302 (0x12e), region = 40 }
  0x14   : > { %508 = dma.hbm_to_vmem [thread:$0]  (!%p506_p13), %s201_s9, 512, %s203_s11, [#allocation3], %s688_s12, %s688_s12, %s689_s13  }
  0x17   : > { %656 = dma.done.wait (%p513_p11), [#allocation3], 512  }
  0x18   : > { %658 = vsyncadd (%p513_p11), [#allocation3], 4294966784  ;;  %p288_p0 = scmp.lt.s32.totalorder %s677_s21, 0  ;;  %v690_v0 = vmov 0   ;;  %v316_v1 = vld [vmem:[#allocation2 + $0x18] sm:$0xff]  ;;  %v315_v2 = vld [vmem:[#allocation2 + $0x10] sm:$0xff]  ;;  %v357_v14 = vlaneseq  ;;  %s389_s16 = scalar_lea.hbm %s850_s5, %s677_s21 }
  0x19   : > { %570 = vset.pattern.permute.xlu0 %v690_v0  ;;  %336 = vmatpush.msra.mxu0 %v316_v1  ;;  %v314_v4 = vld [vmem:[#allocation2 + $0x8] sm:$0xff]  ;;  %v313_v5 = vld [vmem:[#allocation2] sm:$0xff]  ;;  %vm320_vm0 = vcmask 261120   ;;  %s285_s11 = sand.u32 1, %s669_s19   ;;  %v691_v13 = vmov 0.0   ;;  %s496_s13 = sshll.u32 %s677_s21, 3 }
  0x1a   : > { %s289_s14 = scalar_select %p288_p0, %s677_s21, 0  ;;  %v572_v7 = vld [vmem:[%s849_s4] ss:$0 sm:$0xff]  ;;  %v358_v15 = vshrl.u32 %v357_v14, 7  ;;  %v360_v16 = vstv %s496_s13  ;;  %vm692_vm3 = vmmov 1  }
  0x1b   : > { %337 = vmatpush.msra.mxu0 %v315_v2  ;;  %v571_v8 = vld [vmem:[%s848_s3] ss:$0 sm:$0xff]  ;;  %s799_s12 = scalar_lea.vmem [#allocation5], %s285_s11  ;;  %s381_s25 = scalar_lea.sflag [#allocation4], %s285_s11 }
  0x1c   : > { %s861_s14 = smov (!%p288_p0, %s289_s14), 0  ;;  %311 = vst [vmem:[%s799_s12] sm:$0x1] %v691_v13  ;;  %v361_v17 = vadd.s32 %v360_v16, %v358_v15  ;;  %s391_s17 = sshll.u32 %s799_s12, 4  ;;  %s392_s17 = int_to_ptr.vmem [resolvable:$true] %s391_s17 }
  0x1d   : > { %s490_s15 = sshll.u32 %s861_s14, 3  ;;  %338 = vmatpush.msra.mxu0 %v314_v4  ;;  %s623_s8 = scalar_lea.hbm %s850_s5, 2 }
  0x1e   : > { %s303_s24 = scalar_lea.vmem %s846_s1, %s490_s15  ;;  %s293_s29 = scalar_lea.vmem %s845_s0, %s490_s15  ;;  %vm362_vm2 = vcmp.lt.s32.totalorder %v361_v17, 8 }
  0x1f   : > { %v319_v3 = vld [vmem:[%s303_s24] sm:$0xff]  ;;  %339 = vmatpush.msra.mxu0 %v313_v5  ;;  %s393_s24 = sshll.u32 %s389_s16, 4  ;;  %s394_s24 = int_to_ptr.hbm [resolvable:$true] %s393_s24 }
  0x20   : > { %350 = vperm.xlu0 %570, %v319_v3   ;;  %v312_v6 = vld [vmem:[%s293_s29] sm:$0xff]  ;;  %s617_s27 = sshra.s32 %s394_s24, 4  ;;  %s618_s27 = int_to_ptr.hbm [resolvable:$true] %s617_s27 }
  0x21   : > { %495 = vmatmul.msk.f32.vlgmr.msra.gmra.mxu0 %vm320_vm0, %v312_v6  ;;  %s619_s29 = scalar_lea.hbm %s618_s27, 1  ;;  %p624_p5 = scmp.lt.s32.totalorder %s618_s27, %s850_s5 }
  0x22   : > { %p620_p1 = scmp.ne.s32.totalorder %s618_s27, %s619_s29  ;;  %p625_p6 = scmp.lt.s32.totalorder %s623_s8, %s619_s29 }
  0x23   : > { %v371_v28 = vld [vmem:[%s799_s12] sm:$0x1] }
  0x24   : > { %p621_p2 = pnand %p620_p1, %p763_p4  ;;  %p626_p7 = por %p625_p6, %p624_p5 }
  0x26   : > { %p622_p3 = pneg %p621_p2 }
  0x28   : > { %p627_p9 = pnand %p626_p7, %p622_p3 }
  0x92   : > { %v351_v9 = vpop.permute.xlu0 %350 }
  0x93   : > { %vm352_vm1 = vcmp.eq.s32.totalorder %v572_v7, %v351_v9 }
  0x94   : > { %vm363_vm4 = vmxor %vm352_vm1, %vm692_vm3 }
  0x95   : > { %vm366_vm5 = vmand %vm362_vm2, %vm363_vm4 }
  0x9e   : > { %v341_v10 = vpop.f32.mrf.mxu0 }
  0x9f   : > { %v347_v11 = vsub.f32 %v571_v8, %v341_v10 }
  0xa1   : > { %v353_v12 = vsel %vm352_vm1, %v347_v11, 0.0 }
  0xa2   : > { %354 = vadd.xlane.f32.xlu0 %v353_v12 }
 0x115   : > { %v355_v18 = vpop.xlane.xlu0 %354 }
 0x116   : > { %v367_v19 = vadd.f32 0.5, %v355_v18 }
 0x118   : > { %v368_v20 = vsub.f32 %v367_v19, %v347_v11 }
 0x11a   : > { %v369_v21 = vmax.f32 %v368_v20, 0.0 }
 0x11c   : > { %v370_v22 = vsel %vm366_vm5, %v369_v21, 0.0 }
 0x11d   : > { %v372_v23 = vrot.slane %v370_v22, 4 }
 0x11f   : > { %v373_v24 = vadd.f32 %v372_v23, %v370_v22 }
 0x121   : > { %v374_v25 = vrot.slane %v373_v24, 2 }
 0x123   : > { %v375_v26 = vadd.f32 %v374_v25, %v373_v24 }
 0x125   : > { %v376_v27 = vrot.slane %v375_v26, 1 }
 0x127   : > { %v377_v29 = vadd.f32 %v376_v27, %v375_v26 }
 0x129   : > { %v378_v30 = vadd.f32 %v377_v29, %v371_v28 }
 0x12b   : > { %379 = vst [vmem:[%s799_s12] sm:$0x1] %v378_v30 }
 0x12c   : > { %630 = shalt.err (!%p627_p9)
}
 0x12d   : > { %503 = dma.vmem_to_hbm [thread:$0]  (%p763_p4), %s392_s17, 16, %s394_s24, %s381_s25  }
 0x12e PF: > { %p515_p10 = scmp.ge.s32.totalorder %s685_s23, 2  ;;  %s405_s11 = sand.u32 1, %s665_s18  }
 0x12f   : > { %s406_s12 = scalar_lea.sflag [#allocation4], %s405_s11 }
 0x130   : > { %p510_p11 = pnand %p515_p10, %p770_p8 }
 0x132   : > { %p511_p12 = pneg %p510_p11 }
 0x134   : > { %660 = dma.done.wait (%p511_p12), %s406_s12, 16  }
 0x135   : > { %662 = vsyncadd (%p511_p12), %s406_s12, 4294967280  ;;  %s19_s23 = sadd.s32 1, %s685_s23   ;;  %s853_s18 = smov %s669_s19 }
 0x136   : > { %p16_p13 = scmp.ge.s32.totalorder %s19_s23, 4   ;;  %s854_s19 = smov %s673_s20 }
 0x137   : > { %s855_s20 = smov %s776_s6  ;;  %s856_s21 = smov %s681_s22 }
 0x138   : > { %s857_s22 = smov %s859_s26  ;;  %18 = sbr.rel (!%p16_p13) target bundleno = 5 (0x5), region = 87 }
 0x13d   :  { %411 = vsyncpa [#allocation3], 1 }
 0x13e   :  { %413 = vsyncpa [#allocation3 + $0x1], 1 }
 0x13f   :  { %414 = vsyncpa [#allocation4], 1 }
 0x140   :  { %416 = vsyncpa [#allocation4 + $0x1], 1 }

</bundles_post_ra>
